<compile_context>
chip_gen: v5e
topology: v5e:2x2
jax: 0.10.0
libtpu: 0.0.40
codegen_flags: <defaults>
</compile_context>

<pallas_src>
import functools

import jax
import jax.numpy as jnp
import numpy as np
from jax import lax
from jax.experimental import pallas as pl
from jax.experimental.pallas import tpu as pltpu


# ---------------------------------------------------------------------------
# In-kernel helpers
# ---------------------------------------------------------------------------
def _roll_lanes(x, shift):
    """Circular roll along the last (lane) axis: out[..., j] = x[..., (j - shift) % n].

    Implemented as two static lane slices + a lane concatenate (exact jnp.roll
    semantics, no dependence on pltpu.roll sign conventions)."""
    n = x.shape[-1]
    s = shift % n
    if s == 0:
        return x
    return jnp.concatenate([x[..., n - s:], x[..., :n - s]], axis=-1)


def _conv_kernel(x_ref, w_ref, b_ref, col_ref, o_ref, *,
                 bn, h, w, kh, kw, cin, cout, use_mxu):
    """Per grid step: `bn` images in (Cin, H*W) layout -> (Cout, H*W) outputs.

    x_ref  : (bn, Cin, H*W)        activation, channels on sublanes, H*W on lanes
    w_ref  : (Cout, kh*kw*Cin)     weights, row-major over (tap, Cin)
    b_ref  : (Cout, 1)             f32 bias (zeros when the module has none)
    col_ref: (1, H*W)              int32 lane index modulo W (precomputed in wrapper)
    o_ref  : (bn, Cout, H*W)       output block (lane-dense stores)
    """
    hw = h * w
    pad_h = kh // 2
    pad_w = kw // 2

    col = col_ref[...]                       # (1, hw) int32
    bias = b_ref[...].astype(jnp.float32)    # (cout, 1)
    if use_mxu:
        w_mat = w_ref[...]                   # (cout, kh*kw*cin), compute dtype
    else:
        w_mat = w_ref[...].astype(jnp.float32)

    for b in range(bn):
        x = x_ref[b]                         # (cin, hw)

        # kw circularly W-shifted variants of x.  A W-shift by s in flattened
        # (H*W) lane space is select(lane%W >= s, roll(x, s), roll(x, s - W)).
        variants = []
        for dx in range(kw):
            s = (pad_w - dx) % w
            if s == 0:
                variants.append(x)
            else:
                rolled = _roll_lanes(x, s)
                wrapped = _roll_lanes(x, s - w)
                variants.append(jnp.where(col >= s, rolled, wrapped))

        # kh*kw taps: an H-shift by s_h is an exact flat lane roll by s_h * W.
        # Tap order (dy-major, dx-minor, then cin) matches the weight layout.
        taps = []
        for dy in range(kh):
            sh = ((pad_h - dy) % h) * w
            for dx in range(kw):
                taps.append(_roll_lanes(variants[dx], sh))

        if use_mxu:
            # VMEM-built im2col + single wide GEMM (contraction = kh*kw*cin).
            x_col = jnp.concatenate(taps, axis=0)          # (kh*kw*cin, hw)
            acc = jnp.dot(w_mat, x_col, preferred_element_type=jnp.float32)
        else:
            # Tiny contraction: an MXU matmul would be ~cin/256 utilized; do the
            # reduction as broadcast-FMAs on full-lane-width (cout, hw) tiles.
            acc = jnp.zeros((cout, hw), jnp.float32)
            for t in range(kh * kw):
                st = taps[t].astype(jnp.float32)           # (cin, hw)
                for ci in range(cin):
                    wcol = w_mat[:, t * cin + ci:t * cin + ci + 1]   # (cout, 1)
                    acc = acc + wcol * st[ci:ci + 1, :]              # (cout, hw)

        o_ref[b] = (acc + bias).astype(o_ref.dtype)


# ---------------------------------------------------------------------------
# Wrapper
# ---------------------------------------------------------------------------
def bjorck_conv2d_forward(x_nchw, weight, bias=None, *, compute_dtype=None,
                          images_per_step=1):
    """x_nchw: (N, Cin, H, W); weight: (Cout, Cin, kh, kw); bias: (Cout,) or None.

    compute_dtype: dtype fed to the contraction (e.g. jnp.bfloat16 on v6e/v7x for
        full MXU throughput and halved activation DMA).  Accumulation/bias stay f32.
    images_per_step: images per grid step.  1 keeps the batch axis "parallel"-
        sharded across v7x TensorCores; raise it for very small images to amortize
        the ~0.35us per-grid-step overhead.
    """
    n, cin, h, w = x_nchw.shape
    cout, cin_w, kh, kw = weight.shape
    assert cin_w == cin
    # kernel_size is an int in the module, so kernels are always square (which
    # makes the _circular_pad H/W cross-wiring moot) — assert so non-square
    # never slips in silently.
    assert kh == kw, "BjorckConv2d uses square kernels (kernel_size is an int)."
    hw = h * w

    bn = images_per_step
    assert n % bn == 0, "images_per_step must divide the batch size."

    out_dtype = x_nchw.dtype
    if compute_dtype is None:
        compute_dtype = x_nchw.dtype

    # Free reshape (and optional cast): stays NCHW, no transpose, no pad pass.
    x_flat = x_nchw.reshape(n, cin, hw).astype(compute_dtype)

    # Weights: (Cout, Cin, kh, kw) -> (Cout, kh*kw*Cin) with column index
    # (dy*kw + dx)*Cin + ci, matching the in-kernel tap stacking order.
    w_all = jnp.transpose(weight, (0, 2, 3, 1)).reshape(cout, kh * kw * cin)
    w_all = w_all.astype(compute_dtype)

    if bias is None:
        b = jnp.zeros((cout, 1), jnp.float32)
    else:
        b = bias.astype(jnp.float32).reshape(cout, 1)

    # Lane index modulo W, precomputed host-side (avoids in-kernel iota/mod).
    colmap = jnp.asarray((np.arange(hw, dtype=np.int32) % w).reshape(1, hw))

    kernel = functools.partial(_conv_kernel, bn=bn, h=h, w=w, kh=kh, kw=kw,
                               cin=cin, cout=cout, use_mxu=(cin > 8))

    out = pl.pallas_call(
        kernel,
        out_shape=jax.ShapeDtypeStruct((n, cout, hw), out_dtype),
        grid_spec=pltpu.PrefetchScalarGridSpec(
            num_scalar_prefetch=0,
            grid=(n // bn,),
            in_specs=[
                pl.BlockSpec((bn, cin, hw), lambda i: (i, 0, 0)),            # activation
                pl.BlockSpec((cout, kh * kw * cin), lambda i: (0, 0)),       # weights
                pl.BlockSpec((cout, 1), lambda i: (0, 0)),                   # bias
                pl.BlockSpec((1, hw), lambda i: (0, 0)),                     # lane%W map
            ],
            out_specs=pl.BlockSpec((bn, cout, hw), lambda i: (i, 0, 0)),
        ),
        compiler_params=pltpu.CompilerParams(
            dimension_semantics=("parallel",)),
    )(x_flat, w_all, b, colmap)

    # (N, Cout, H*W) -> (N, Cout, H, W): contiguous split of the last dim, free.
    return out.reshape(n, cout, h, w)


# ---------------------------------------------------------------------------
# Deterministic parameter init (mirrors BjorckConv2d._initialize)
# ---------------------------------------------------------------------------
def init_bjorck_weight(key, in_channels, out_channels, kernel_size,
                       init="permutation"):
    kh = kw = kernel_size
    k_perm, k_noise = jax.random.split(key)
    max_c = max(out_channels, in_channels)
    min_c = min(out_channels, in_channels)
    perm = jax.random.permutation(k_perm, max_c)[:min_c]
    if init == "identical":
        perm = jnp.sort(perm)
    elif init == "reverse":
        perm = jnp.sort(perm)[::-1]

    matrix = jnp.zeros((out_channels, in_channels), jnp.float32)
    eye = jnp.eye(min_c, dtype=jnp.float32)
    if out_channels < in_channels:
        matrix = matrix.at[:, perm].set(eye)
    else:
        matrix = matrix.at[perm, :].set(eye)

    wgt = jnp.zeros((out_channels, in_channels, kh, kw), jnp.float32)
    wgt = wgt.at[:, :, kh // 2, kw // 2].set(matrix)
    wgt = wgt + 0.005 * jax.random.normal(k_noise, wgt.shape, dtype=jnp.float32)
    return wgt


# ---------------------------------------------------------------------------
# Demo / self-check
# ---------------------------------------------------------------------------
if __name__ == "__main__":
    def reference(x, wgt, b, k):
        xp = jnp.pad(x, ((0, 0), (0, 0), (k // 2, (k - 1) // 2), (k // 2, (k - 1) // 2)),
                     mode="wrap")
        out = lax.conv_general_dilated(
            xp, wgt, window_strides=(1, 1), padding="VALID",
            dimension_numbers=("NCHW", "OIHW", "NCHW"),
            precision=lax.Precision.HIGHEST)
        if b is not None:
            out = out + b.reshape(1, -1, 1, 1)
        return out

    key = jax.random.PRNGKey(0)
    k1, k2, k3, k4, k5 = jax.random.split(key, 5)

    # Config 1: module-default tiny channels (bias=False) -> VPU contraction path.
    x1 = jax.random.normal(k1, (2, 4, 16, 16), dtype=jnp.float32)
    w1 = init_bjorck_weight(k2, 4, 4, 3, init="permutation")
    o1 = jax.block_until_ready(bjorck_conv2d_forward(x1, w1, None))
    assert o1.shape == (2, 4, 16, 16)
    np.testing.assert_allclose(np.asarray(o1), np.asarray(reference(x1, w1, None, 3)),
                               rtol=1e-5, atol=1e-5)

    # Config 2: wider channels + bias -> single MXU GEMM per image, f32.
    x2 = jax.random.normal(k3, (2, 32, 16, 16), dtype=jnp.float32)
    w2 = init_bjorck_weight(k4, 32, 32, 3, init="permutation")
    b2 = 0.1 * jax.random.normal(k5, (32,), dtype=jnp.float32)
    o2 = jax.block_until_ready(bjorck_conv2d_forward(x2, w2, b2))
    assert o2.shape == (2, 32, 16, 16)
    np.testing.assert_allclose(np.asarray(o2), np.asarray(reference(x2, w2, b2, 3)),
                               rtol=1e-4, atol=1e-4)

    # Config 3: bf16 MXU inputs (recommended on v6e/v7x), f32 accumulation.
    o3 = jax.block_until_ready(
        bjorck_conv2d_forward(x2, w2, b2, compute_dtype=jnp.bfloat16))
    np.testing.assert_allclose(np.asarray(o3), np.asarray(reference(x2, w2, b2, 3)),
                               rtol=3e-2, atol=3e-2)

    # Config 4: multiple images per grid step (per-step overhead amortization).
    o4 = jax.block_until_ready(
        bjorck_conv2d_forward(x2, w2, b2, images_per_step=2))
    np.testing.assert_allclose(np.asarray(o4), np.asarray(reference(x2, w2, b2, 3)),
                               rtol=1e-4, atol=1e-4)

    print("KERNEL_OK")
</pallas_src>

<mosaic_0001>
module attributes {stable_mosaic.version = 11 : i64} {
  func.func @_conv_kernel(%arg0: i32, %arg1: memref<1x4x256xf32, #tpu.memory_space<vmem>>, %arg2: memref<4x36xf32, #tpu.memory_space<vmem>>, %arg3: memref<4x1xf32, #tpu.memory_space<vmem>>, %arg4: memref<1x256xi32, #tpu.memory_space<vmem>>, %arg5: memref<1x4x256xf32, #tpu.memory_space<vmem>>) attributes {dimension_semantics = [#tpu.dimension_semantics<parallel>], iteration_bounds = array<i64: 2>, scalar_prefetch = 0 : i64, scratch_operands = 0 : i64, tpu.core_type = #tpu.core_type<tc>, window_params = [{transform_indices = @transform_0, window_bounds = array<i64: 1, 4, 256>}, {pipeline_mode = #tpu.pipeline_mode<synchronous>, transform_indices = @transform_1, window_bounds = array<i64: 4, 36>}, {pipeline_mode = #tpu.pipeline_mode<synchronous>, transform_indices = @transform_2, window_bounds = array<i64: 4, 1>}, {pipeline_mode = #tpu.pipeline_mode<synchronous>, transform_indices = @transform_3, window_bounds = array<i64: 1, 256>}, {transform_indices = @transform_4, window_bounds = array<i64: 1, 4, 256>}]} {
    %c0 = arith.constant 0 : index
    %c0_0 = arith.constant 0 : index
    %0 = vector.load %arg4[%c0, %c0_0] : memref<1x256xi32, #tpu.memory_space<vmem>>, vector<1x256xi32>
    %c0_1 = arith.constant 0 : index
    %c0_2 = arith.constant 0 : index
    %1 = vector.load %arg3[%c0_1, %c0_2] : memref<4x1xf32, #tpu.memory_space<vmem>>, vector<4x1xf32>
    %c0_3 = arith.constant 0 : index
    %c0_4 = arith.constant 0 : index
    %2 = vector.load %arg2[%c0_3, %c0_4] : memref<4x36xf32, #tpu.memory_space<vmem>>, vector<4x36xf32>
    %c0_5 = arith.constant 0 : index
    %c0_6 = arith.constant 0 : index
    %c0_7 = arith.constant 0 : index
    %3 = vector.load %arg1[%c0_5, %c0_6, %c0_7] : memref<1x4x256xf32, #tpu.memory_space<vmem>>, vector<1x4x256xf32>
    %4 = vector.shape_cast %3 : vector<1x4x256xf32> to vector<4x256xf32>
    %5 = vector.extract_strided_slice %4 {offsets = [0, 255], sizes = [4, 1], strides = [1, 1]} : vector<4x256xf32> to vector<4x1xf32>
    %6 = vector.extract_strided_slice %4 {offsets = [0, 0], sizes = [4, 255], strides = [1, 1]} : vector<4x256xf32> to vector<4x255xf32>
    %7 = tpu.concatenate %5, %6 in 1 : vector<4x1xf32>, vector<4x255xf32> -> vector<4x256xf32>
    %8 = vector.extract_strided_slice %4 {offsets = [0, 15], sizes = [4, 241], strides = [1, 1]} : vector<4x256xf32> to vector<4x241xf32>
    %9 = vector.extract_strided_slice %4 {offsets = [0, 0], sizes = [4, 15], strides = [1, 1]} : vector<4x256xf32> to vector<4x15xf32>
    %10 = tpu.concatenate %8, %9 in 1 : vector<4x241xf32>, vector<4x15xf32> -> vector<4x256xf32>
    %c1_i32 = arith.constant 1 : i32
    %11 = vector.broadcast %c1_i32 : i32 to vector<1x256xi32>
    %12 = arith.cmpi sge, %0, %11 : vector<1x256xi32>
    %13 = vector.shape_cast %12 : vector<1x256xi1> to vector<1x256xi1>
    %14 = vector.broadcast %13 : vector<1x256xi1> to vector<4x256xi1>
    %15 = arith.select %14, %7, %10 : vector<4x256xi1>, vector<4x256xf32>
    %16 = vector.extract_strided_slice %4 {offsets = [0, 241], sizes = [4, 15], strides = [1, 1]} : vector<4x256xf32> to vector<4x15xf32>
    %17 = vector.extract_strided_slice %4 {offsets = [0, 0], sizes = [4, 241], strides = [1, 1]} : vector<4x256xf32> to vector<4x241xf32>
    %18 = tpu.concatenate %16, %17 in 1 : vector<4x15xf32>, vector<4x241xf32> -> vector<4x256xf32>
    %19 = vector.extract_strided_slice %4 {offsets = [0, 1], sizes = [4, 255], strides = [1, 1]} : vector<4x256xf32> to vector<4x255xf32>
    %20 = vector.extract_strided_slice %4 {offsets = [0, 0], sizes = [4, 1], strides = [1, 1]} : vector<4x256xf32> to vector<4x1xf32>
    %21 = tpu.concatenate %19, %20 in 1 : vector<4x255xf32>, vector<4x1xf32> -> vector<4x256xf32>
    %c15_i32 = arith.constant 15 : i32
    %22 = vector.broadcast %c15_i32 : i32 to vector<1x256xi32>
    %23 = arith.cmpi sge, %0, %22 : vector<1x256xi32>
    %24 = vector.shape_cast %23 : vector<1x256xi1> to vector<1x256xi1>
    %25 = vector.broadcast %24 : vector<1x256xi1> to vector<4x256xi1>
    %26 = arith.select %25, %18, %21 : vector<4x256xi1>, vector<4x256xf32>
    %27 = vector.extract_strided_slice %15 {offsets = [0, 240], sizes = [4, 16], strides = [1, 1]} : vector<4x256xf32> to vector<4x16xf32>
    %28 = vector.extract_strided_slice %15 {offsets = [0, 0], sizes = [4, 240], strides = [1, 1]} : vector<4x256xf32> to vector<4x240xf32>
    %29 = tpu.concatenate %27, %28 in 1 : vector<4x16xf32>, vector<4x240xf32> -> vector<4x256xf32>
    %30 = vector.extract_strided_slice %4 {offsets = [0, 240], sizes = [4, 16], strides = [1, 1]} : vector<4x256xf32> to vector<4x16xf32>
    %31 = vector.extract_strided_slice %4 {offsets = [0, 0], sizes = [4, 240], strides = [1, 1]} : vector<4x256xf32> to vector<4x240xf32>
    %32 = tpu.concatenate %30, %31 in 1 : vector<4x16xf32>, vector<4x240xf32> -> vector<4x256xf32>
    %33 = vector.extract_strided_slice %26 {offsets = [0, 240], sizes = [4, 16], strides = [1, 1]} : vector<4x256xf32> to vector<4x16xf32>
    %34 = vector.extract_strided_slice %26 {offsets = [0, 0], sizes = [4, 240], strides = [1, 1]} : vector<4x256xf32> to vector<4x240xf32>
    %35 = tpu.concatenate %33, %34 in 1 : vector<4x16xf32>, vector<4x240xf32> -> vector<4x256xf32>
    %36 = vector.extract_strided_slice %15 {offsets = [0, 16], sizes = [4, 240], strides = [1, 1]} : vector<4x256xf32> to vector<4x240xf32>
    %37 = vector.extract_strided_slice %15 {offsets = [0, 0], sizes = [4, 16], strides = [1, 1]} : vector<4x256xf32> to vector<4x16xf32>
    %38 = tpu.concatenate %36, %37 in 1 : vector<4x240xf32>, vector<4x16xf32> -> vector<4x256xf32>
    %39 = vector.extract_strided_slice %4 {offsets = [0, 16], sizes = [4, 240], strides = [1, 1]} : vector<4x256xf32> to vector<4x240xf32>
    %40 = vector.extract_strided_slice %4 {offsets = [0, 0], sizes = [4, 16], strides = [1, 1]} : vector<4x256xf32> to vector<4x16xf32>
    %41 = tpu.concatenate %39, %40 in 1 : vector<4x240xf32>, vector<4x16xf32> -> vector<4x256xf32>
    %42 = vector.extract_strided_slice %26 {offsets = [0, 16], sizes = [4, 240], strides = [1, 1]} : vector<4x256xf32> to vector<4x240xf32>
    %43 = vector.extract_strided_slice %26 {offsets = [0, 0], sizes = [4, 16], strides = [1, 1]} : vector<4x256xf32> to vector<4x16xf32>
    %44 = tpu.concatenate %42, %43 in 1 : vector<4x240xf32>, vector<4x16xf32> -> vector<4x256xf32>
    %cst = arith.constant 0.000000e+00 : f32
    %45 = vector.broadcast %cst : f32 to vector<4x256xf32>
    %46 = vector.extract_strided_slice %2 {offsets = [0, 0], sizes = [4, 1], strides = [1, 1]} : vector<4x36xf32> to vector<4x1xf32>
    %47 = vector.extract_strided_slice %29 {offsets = [0, 0], sizes = [1, 256], strides = [1, 1]} : vector<4x256xf32> to vector<1x256xf32>
    %48 = vector.broadcast %46 : vector<4x1xf32> to vector<4x256xf32>
    %49 = vector.broadcast %47 : vector<1x256xf32> to vector<4x256xf32>
    %50 = arith.mulf %48, %49 : vector<4x256xf32>
    %51 = arith.addf %45, %50 : vector<4x256xf32>
    %52 = vector.extract_strided_slice %2 {offsets = [0, 1], sizes = [4, 1], strides = [1, 1]} : vector<4x36xf32> to vector<4x1xf32>
    %53 = vector.extract_strided_slice %29 {offsets = [1, 0], sizes = [1, 256], strides = [1, 1]} : vector<4x256xf32> to vector<1x256xf32>
    %54 = vector.broadcast %52 : vector<4x1xf32> to vector<4x256xf32>
    %55 = vector.broadcast %53 : vector<1x256xf32> to vector<4x256xf32>
    %56 = arith.mulf %54, %55 : vector<4x256xf32>
    %57 = arith.addf %51, %56 : vector<4x256xf32>
    %58 = vector.extract_strided_slice %2 {offsets = [0, 2], sizes = [4, 1], strides = [1, 1]} : vector<4x36xf32> to vector<4x1xf32>
    %59 = vector.extract_strided_slice %29 {offsets = [2, 0], sizes = [1, 256], strides = [1, 1]} : vector<4x256xf32> to vector<1x256xf32>
    %60 = vector.broadcast %58 : vector<4x1xf32> to vector<4x256xf32>
    %61 = vector.broadcast %59 : vector<1x256xf32> to vector<4x256xf32>
    %62 = arith.mulf %60, %61 : vector<4x256xf32>
    %63 = arith.addf %57, %62 : vector<4x256xf32>
    %64 = vector.extract_strided_slice %2 {offsets = [0, 3], sizes = [4, 1], strides = [1, 1]} : vector<4x36xf32> to vector<4x1xf32>
    %65 = vector.extract_strided_slice %29 {offsets = [3, 0], sizes = [1, 256], strides = [1, 1]} : vector<4x256xf32> to vector<1x256xf32>
    %66 = vector.broadcast %64 : vector<4x1xf32> to vector<4x256xf32>
    %67 = vector.broadcast %65 : vector<1x256xf32> to vector<4x256xf32>
    %68 = arith.mulf %66, %67 : vector<4x256xf32>
    %69 = arith.addf %63, %68 : vector<4x256xf32>
    %70 = vector.extract_strided_slice %2 {offsets = [0, 4], sizes = [4, 1], strides = [1, 1]} : vector<4x36xf32> to vector<4x1xf32>
    %71 = vector.extract_strided_slice %32 {offsets = [0, 0], sizes = [1, 256], strides = [1, 1]} : vector<4x256xf32> to vector<1x256xf32>
    %72 = vector.broadcast %70 : vector<4x1xf32> to vector<4x256xf32>
    %73 = vector.broadcast %71 : vector<1x256xf32> to vector<4x256xf32>
    %74 = arith.mulf %72, %73 : vector<4x256xf32>
    %75 = arith.addf %69, %74 : vector<4x256xf32>
    %76 = vector.extract_strided_slice %2 {offsets = [0, 5], sizes = [4, 1], strides = [1, 1]} : vector<4x36xf32> to vector<4x1xf32>
    %77 = vector.extract_strided_slice %32 {offsets = [1, 0], sizes = [1, 256], strides = [1, 1]} : vector<4x256xf32> to vector<1x256xf32>
    %78 = vector.broadcast %76 : vector<4x1xf32> to vector<4x256xf32>
    %79 = vector.broadcast %77 : vector<1x256xf32> to vector<4x256xf32>
    %80 = arith.mulf %78, %79 : vector<4x256xf32>
    %81 = arith.addf %75, %80 : vector<4x256xf32>
    %82 = vector.extract_strided_slice %2 {offsets = [0, 6], sizes = [4, 1], strides = [1, 1]} : vector<4x36xf32> to vector<4x1xf32>
    %83 = vector.extract_strided_slice %32 {offsets = [2, 0], sizes = [1, 256], strides = [1, 1]} : vector<4x256xf32> to vector<1x256xf32>
    %84 = vector.broadcast %82 : vector<4x1xf32> to vector<4x256xf32>
    %85 = vector.broadcast %83 : vector<1x256xf32> to vector<4x256xf32>
    %86 = arith.mulf %84, %85 : vector<4x256xf32>
    %87 = arith.addf %81, %86 : vector<4x256xf32>
    %88 = vector.extract_strided_slice %2 {offsets = [0, 7], sizes = [4, 1], strides = [1, 1]} : vector<4x36xf32> to vector<4x1xf32>
    %89 = vector.extract_strided_slice %32 {offsets = [3, 0], sizes = [1, 256], strides = [1, 1]} : vector<4x256xf32> to vector<1x256xf32>
    %90 = vector.broadcast %88 : vector<4x1xf32> to vector<4x256xf32>
    %91 = vector.broadcast %89 : vector<1x256xf32> to vector<4x256xf32>
    %92 = arith.mulf %90, %91 : vector<4x256xf32>
    %93 = arith.addf %87, %92 : vector<4x256xf32>
    %94 = vector.extract_strided_slice %2 {offsets = [0, 8], sizes = [4, 1], strides = [1, 1]} : vector<4x36xf32> to vector<4x1xf32>
    %95 = vector.extract_strided_slice %35 {offsets = [0, 0], sizes = [1, 256], strides = [1, 1]} : vector<4x256xf32> to vector<1x256xf32>
    %96 = vector.broadcast %94 : vector<4x1xf32> to vector<4x256xf32>
    %97 = vector.broadcast %95 : vector<1x256xf32> to vector<4x256xf32>
    %98 = arith.mulf %96, %97 : vector<4x256xf32>
    %99 = arith.addf %93, %98 : vector<4x256xf32>
    %100 = vector.extract_strided_slice %2 {offsets = [0, 9], sizes = [4, 1], strides = [1, 1]} : vector<4x36xf32> to vector<4x1xf32>
    %101 = vector.extract_strided_slice %35 {offsets = [1, 0], sizes = [1, 256], strides = [1, 1]} : vector<4x256xf32> to vector<1x256xf32>
    %102 = vector.broadcast %100 : vector<4x1xf32> to vector<4x256xf32>
    %103 = vector.broadcast %101 : vector<1x256xf32> to vector<4x256xf32>
    %104 = arith.mulf %102, %103 : vector<4x256xf32>
    %105 = arith.addf %99, %104 : vector<4x256xf32>
    %106 = vector.extract_strided_slice %2 {offsets = [0, 10], sizes = [4, 1], strides = [1, 1]} : vector<4x36xf32> to vector<4x1xf32>
    %107 = vector.extract_strided_slice %35 {offsets = [2, 0], sizes = [1, 256], strides = [1, 1]} : vector<4x256xf32> to vector<1x256xf32>
    %108 = vector.broadcast %106 : vector<4x1xf32> to vector<4x256xf32>
    %109 = vector.broadcast %107 : vector<1x256xf32> to vector<4x256xf32>
    %110 = arith.mulf %108, %109 : vector<4x256xf32>
    %111 = arith.addf %105, %110 : vector<4x256xf32>
    %112 = vector.extract_strided_slice %2 {offsets = [0, 11], sizes = [4, 1], strides = [1, 1]} : vector<4x36xf32> to vector<4x1xf32>
    %113 = vector.extract_strided_slice %35 {offsets = [3, 0], sizes = [1, 256], strides = [1, 1]} : vector<4x256xf32> to vector<1x256xf32>
    %114 = vector.broadcast %112 : vector<4x1xf32> to vector<4x256xf32>
    %115 = vector.broadcast %113 : vector<1x256xf32> to vector<4x256xf32>
    %116 = arith.mulf %114, %115 : vector<4x256xf32>
    %117 = arith.addf %111, %116 : vector<4x256xf32>
    %118 = vector.extract_strided_slice %2 {offsets = [0, 12], sizes = [4, 1], strides = [1, 1]} : vector<4x36xf32> to vector<4x1xf32>
    %119 = vector.extract_strided_slice %15 {offsets = [0, 0], sizes = [1, 256], strides = [1, 1]} : vector<4x256xf32> to vector<1x256xf32>
    %120 = vector.broadcast %118 : vector<4x1xf32> to vector<4x256xf32>
    %121 = vector.broadcast %119 : vector<1x256xf32> to vector<4x256xf32>
    %122 = arith.mulf %120, %121 : vector<4x256xf32>
    %123 = arith.addf %117, %122 : vector<4x256xf32>
    %124 = vector.extract_strided_slice %2 {offsets = [0, 13], sizes = [4, 1], strides = [1, 1]} : vector<4x36xf32> to vector<4x1xf32>
    %125 = vector.extract_strided_slice %15 {offsets = [1, 0], sizes = [1, 256], strides = [1, 1]} : vector<4x256xf32> to vector<1x256xf32>
    %126 = vector.broadcast %124 : vector<4x1xf32> to vector<4x256xf32>
    %127 = vector.broadcast %125 : vector<1x256xf32> to vector<4x256xf32>
    %128 = arith.mulf %126, %127 : vector<4x256xf32>
    %129 = arith.addf %123, %128 : vector<4x256xf32>
    %130 = vector.extract_strided_slice %2 {offsets = [0, 14], sizes = [4, 1], strides = [1, 1]} : vector<4x36xf32> to vector<4x1xf32>
    %131 = vector.extract_strided_slice %15 {offsets = [2, 0], sizes = [1, 256], strides = [1, 1]} : vector<4x256xf32> to vector<1x256xf32>
    %132 = vector.broadcast %130 : vector<4x1xf32> to vector<4x256xf32>
    %133 = vector.broadcast %131 : vector<1x256xf32> to vector<4x256xf32>
    %134 = arith.mulf %132, %133 : vector<4x256xf32>
    %135 = arith.addf %129, %134 : vector<4x256xf32>
    %136 = vector.extract_strided_slice %2 {offsets = [0, 15], sizes = [4, 1], strides = [1, 1]} : vector<4x36xf32> to vector<4x1xf32>
    %137 = vector.extract_strided_slice %15 {offsets = [3, 0], sizes = [1, 256], strides = [1, 1]} : vector<4x256xf32> to vector<1x256xf32>
    %138 = vector.broadcast %136 : vector<4x1xf32> to vector<4x256xf32>
    %139 = vector.broadcast %137 : vector<1x256xf32> to vector<4x256xf32>
    %140 = arith.mulf %138, %139 : vector<4x256xf32>
    %141 = arith.addf %135, %140 : vector<4x256xf32>
    %142 = vector.extract_strided_slice %2 {offsets = [0, 16], sizes = [4, 1], strides = [1, 1]} : vector<4x36xf32> to vector<4x1xf32>
    %143 = vector.extract_strided_slice %4 {offsets = [0, 0], sizes = [1, 256], strides = [1, 1]} : vector<4x256xf32> to vector<1x256xf32>
    %144 = vector.broadcast %142 : vector<4x1xf32> to vector<4x256xf32>
    %145 = vector.broadcast %143 : vector<1x256xf32> to vector<4x256xf32>
    %146 = arith.mulf %144, %145 : vector<4x256xf32>
    %147 = arith.addf %141, %146 : vector<4x256xf32>
    %148 = vector.extract_strided_slice %2 {offsets = [0, 17], sizes = [4, 1], strides = [1, 1]} : vector<4x36xf32> to vector<4x1xf32>
    %149 = vector.extract_strided_slice %4 {offsets = [1, 0], sizes = [1, 256], strides = [1, 1]} : vector<4x256xf32> to vector<1x256xf32>
    %150 = vector.broadcast %148 : vector<4x1xf32> to vector<4x256xf32>
    %151 = vector.broadcast %149 : vector<1x256xf32> to vector<4x256xf32>
    %152 = arith.mulf %150, %151 : vector<4x256xf32>
    %153 = arith.addf %147, %152 : vector<4x256xf32>
    %154 = vector.extract_strided_slice %2 {offsets = [0, 18], sizes = [4, 1], strides = [1, 1]} : vector<4x36xf32> to vector<4x1xf32>
    %155 = vector.extract_strided_slice %4 {offsets = [2, 0], sizes = [1, 256], strides = [1, 1]} : vector<4x256xf32> to vector<1x256xf32>
    %156 = vector.broadcast %154 : vector<4x1xf32> to vector<4x256xf32>
    %157 = vector.broadcast %155 : vector<1x256xf32> to vector<4x256xf32>
    %158 = arith.mulf %156, %157 : vector<4x256xf32>
    %159 = arith.addf %153, %158 : vector<4x256xf32>
    %160 = vector.extract_strided_slice %2 {offsets = [0, 19], sizes = [4, 1], strides = [1, 1]} : vector<4x36xf32> to vector<4x1xf32>
    %161 = vector.extract_strided_slice %4 {offsets = [3, 0], sizes = [1, 256], strides = [1, 1]} : vector<4x256xf32> to vector<1x256xf32>
    %162 = vector.broadcast %160 : vector<4x1xf32> to vector<4x256xf32>
    %163 = vector.broadcast %161 : vector<1x256xf32> to vector<4x256xf32>
    %164 = arith.mulf %162, %163 : vector<4x256xf32>
    %165 = arith.addf %159, %164 : vector<4x256xf32>
    %166 = vector.extract_strided_slice %2 {offsets = [0, 20], sizes = [4, 1], strides = [1, 1]} : vector<4x36xf32> to vector<4x1xf32>
    %167 = vector.extract_strided_slice %26 {offsets = [0, 0], sizes = [1, 256], strides = [1, 1]} : vector<4x256xf32> to vector<1x256xf32>
    %168 = vector.broadcast %166 : vector<4x1xf32> to vector<4x256xf32>
    %169 = vector.broadcast %167 : vector<1x256xf32> to vector<4x256xf32>
    %170 = arith.mulf %168, %169 : vector<4x256xf32>
    %171 = arith.addf %165, %170 : vector<4x256xf32>
    %172 = vector.extract_strided_slice %2 {offsets = [0, 21], sizes = [4, 1], strides = [1, 1]} : vector<4x36xf32> to vector<4x1xf32>
    %173 = vector.extract_strided_slice %26 {offsets = [1, 0], sizes = [1, 256], strides = [1, 1]} : vector<4x256xf32> to vector<1x256xf32>
    %174 = vector.broadcast %172 : vector<4x1xf32> to vector<4x256xf32>
    %175 = vector.broadcast %173 : vector<1x256xf32> to vector<4x256xf32>
    %176 = arith.mulf %174, %175 : vector<4x256xf32>
    %177 = arith.addf %171, %176 : vector<4x256xf32>
    %178 = vector.extract_strided_slice %2 {offsets = [0, 22], sizes = [4, 1], strides = [1, 1]} : vector<4x36xf32> to vector<4x1xf32>
    %179 = vector.extract_strided_slice %26 {offsets = [2, 0], sizes = [1, 256], strides = [1, 1]} : vector<4x256xf32> to vector<1x256xf32>
    %180 = vector.broadcast %178 : vector<4x1xf32> to vector<4x256xf32>
    %181 = vector.broadcast %179 : vector<1x256xf32> to vector<4x256xf32>
    %182 = arith.mulf %180, %181 : vector<4x256xf32>
    %183 = arith.addf %177, %182 : vector<4x256xf32>
    %184 = vector.extract_strided_slice %2 {offsets = [0, 23], sizes = [4, 1], strides = [1, 1]} : vector<4x36xf32> to vector<4x1xf32>
    %185 = vector.extract_strided_slice %26 {offsets = [3, 0], sizes = [1, 256], strides = [1, 1]} : vector<4x256xf32> to vector<1x256xf32>
    %186 = vector.broadcast %184 : vector<4x1xf32> to vector<4x256xf32>
    %187 = vector.broadcast %185 : vector<1x256xf32> to vector<4x256xf32>
    %188 = arith.mulf %186, %187 : vector<4x256xf32>
    %189 = arith.addf %183, %188 : vector<4x256xf32>
    %190 = vector.extract_strided_slice %2 {offsets = [0, 24], sizes = [4, 1], strides = [1, 1]} : vector<4x36xf32> to vector<4x1xf32>
    %191 = vector.extract_strided_slice %38 {offsets = [0, 0], sizes = [1, 256], strides = [1, 1]} : vector<4x256xf32> to vector<1x256xf32>
    %192 = vector.broadcast %190 : vector<4x1xf32> to vector<4x256xf32>
    %193 = vector.broadcast %191 : vector<1x256xf32> to vector<4x256xf32>
    %194 = arith.mulf %192, %193 : vector<4x256xf32>
    %195 = arith.addf %189, %194 : vector<4x256xf32>
    %196 = vector.extract_strided_slice %2 {offsets = [0, 25], sizes = [4, 1], strides = [1, 1]} : vector<4x36xf32> to vector<4x1xf32>
    %197 = vector.extract_strided_slice %38 {offsets = [1, 0], sizes = [1, 256], strides = [1, 1]} : vector<4x256xf32> to vector<1x256xf32>
    %198 = vector.broadcast %196 : vector<4x1xf32> to vector<4x256xf32>
    %199 = vector.broadcast %197 : vector<1x256xf32> to vector<4x256xf32>
    %200 = arith.mulf %198, %199 : vector<4x256xf32>
    %201 = arith.addf %195, %200 : vector<4x256xf32>
    %202 = vector.extract_strided_slice %2 {offsets = [0, 26], sizes = [4, 1], strides = [1, 1]} : vector<4x36xf32> to vector<4x1xf32>
    %203 = vector.extract_strided_slice %38 {offsets = [2, 0], sizes = [1, 256], strides = [1, 1]} : vector<4x256xf32> to vector<1x256xf32>
    %204 = vector.broadcast %202 : vector<4x1xf32> to vector<4x256xf32>
    %205 = vector.broadcast %203 : vector<1x256xf32> to vector<4x256xf32>
    %206 = arith.mulf %204, %205 : vector<4x256xf32>
    %207 = arith.addf %201, %206 : vector<4x256xf32>
    %208 = vector.extract_strided_slice %2 {offsets = [0, 27], sizes = [4, 1], strides = [1, 1]} : vector<4x36xf32> to vector<4x1xf32>
    %209 = vector.extract_strided_slice %38 {offsets = [3, 0], sizes = [1, 256], strides = [1, 1]} : vector<4x256xf32> to vector<1x256xf32>
    %210 = vector.broadcast %208 : vector<4x1xf32> to vector<4x256xf32>
    %211 = vector.broadcast %209 : vector<1x256xf32> to vector<4x256xf32>
    %212 = arith.mulf %210, %211 : vector<4x256xf32>
    %213 = arith.addf %207, %212 : vector<4x256xf32>
    %214 = vector.extract_strided_slice %2 {offsets = [0, 28], sizes = [4, 1], strides = [1, 1]} : vector<4x36xf32> to vector<4x1xf32>
    %215 = vector.extract_strided_slice %41 {offsets = [0, 0], sizes = [1, 256], strides = [1, 1]} : vector<4x256xf32> to vector<1x256xf32>
    %216 = vector.broadcast %214 : vector<4x1xf32> to vector<4x256xf32>
    %217 = vector.broadcast %215 : vector<1x256xf32> to vector<4x256xf32>
    %218 = arith.mulf %216, %217 : vector<4x256xf32>
    %219 = arith.addf %213, %218 : vector<4x256xf32>
    %220 = vector.extract_strided_slice %2 {offsets = [0, 29], sizes = [4, 1], strides = [1, 1]} : vector<4x36xf32> to vector<4x1xf32>
    %221 = vector.extract_strided_slice %41 {offsets = [1, 0], sizes = [1, 256], strides = [1, 1]} : vector<4x256xf32> to vector<1x256xf32>
    %222 = vector.broadcast %220 : vector<4x1xf32> to vector<4x256xf32>
    %223 = vector.broadcast %221 : vector<1x256xf32> to vector<4x256xf32>
    %224 = arith.mulf %222, %223 : vector<4x256xf32>
    %225 = arith.addf %219, %224 : vector<4x256xf32>
    %226 = vector.extract_strided_slice %2 {offsets = [0, 30], sizes = [4, 1], strides = [1, 1]} : vector<4x36xf32> to vector<4x1xf32>
    %227 = vector.extract_strided_slice %41 {offsets = [2, 0], sizes = [1, 256], strides = [1, 1]} : vector<4x256xf32> to vector<1x256xf32>
    %228 = vector.broadcast %226 : vector<4x1xf32> to vector<4x256xf32>
    %229 = vector.broadcast %227 : vector<1x256xf32> to vector<4x256xf32>
    %230 = arith.mulf %228, %229 : vector<4x256xf32>
    %231 = arith.addf %225, %230 : vector<4x256xf32>
    %232 = vector.extract_strided_slice %2 {offsets = [0, 31], sizes = [4, 1], strides = [1, 1]} : vector<4x36xf32> to vector<4x1xf32>
    %233 = vector.extract_strided_slice %41 {offsets = [3, 0], sizes = [1, 256], strides = [1, 1]} : vector<4x256xf32> to vector<1x256xf32>
    %234 = vector.broadcast %232 : vector<4x1xf32> to vector<4x256xf32>
    %235 = vector.broadcast %233 : vector<1x256xf32> to vector<4x256xf32>
    %236 = arith.mulf %234, %235 : vector<4x256xf32>
    %237 = arith.addf %231, %236 : vector<4x256xf32>
    %238 = vector.extract_strided_slice %2 {offsets = [0, 32], sizes = [4, 1], strides = [1, 1]} : vector<4x36xf32> to vector<4x1xf32>
    %239 = vector.extract_strided_slice %44 {offsets = [0, 0], sizes = [1, 256], strides = [1, 1]} : vector<4x256xf32> to vector<1x256xf32>
    %240 = vector.broadcast %238 : vector<4x1xf32> to vector<4x256xf32>
    %241 = vector.broadcast %239 : vector<1x256xf32> to vector<4x256xf32>
    %242 = arith.mulf %240, %241 : vector<4x256xf32>
    %243 = arith.addf %237, %242 : vector<4x256xf32>
    %244 = vector.extract_strided_slice %2 {offsets = [0, 33], sizes = [4, 1], strides = [1, 1]} : vector<4x36xf32> to vector<4x1xf32>
    %245 = vector.extract_strided_slice %44 {offsets = [1, 0], sizes = [1, 256], strides = [1, 1]} : vector<4x256xf32> to vector<1x256xf32>
    %246 = vector.broadcast %244 : vector<4x1xf32> to vector<4x256xf32>
    %247 = vector.broadcast %245 : vector<1x256xf32> to vector<4x256xf32>
    %248 = arith.mulf %246, %247 : vector<4x256xf32>
    %249 = arith.addf %243, %248 : vector<4x256xf32>
    %250 = vector.extract_strided_slice %2 {offsets = [0, 34], sizes = [4, 1], strides = [1, 1]} : vector<4x36xf32> to vector<4x1xf32>
    %251 = vector.extract_strided_slice %44 {offsets = [2, 0], sizes = [1, 256], strides = [1, 1]} : vector<4x256xf32> to vector<1x256xf32>
    %252 = vector.broadcast %250 : vector<4x1xf32> to vector<4x256xf32>
    %253 = vector.broadcast %251 : vector<1x256xf32> to vector<4x256xf32>
    %254 = arith.mulf %252, %253 : vector<4x256xf32>
    %255 = arith.addf %249, %254 : vector<4x256xf32>
    %256 = vector.extract_strided_slice %2 {offsets = [0, 35], sizes = [4, 1], strides = [1, 1]} : vector<4x36xf32> to vector<4x1xf32>
    %257 = vector.extract_strided_slice %44 {offsets = [3, 0], sizes = [1, 256], strides = [1, 1]} : vector<4x256xf32> to vector<1x256xf32>
    %258 = vector.broadcast %256 : vector<4x1xf32> to vector<4x256xf32>
    %259 = vector.broadcast %257 : vector<1x256xf32> to vector<4x256xf32>
    %260 = arith.mulf %258, %259 : vector<4x256xf32>
    %261 = arith.addf %255, %260 : vector<4x256xf32>
    %262 = vector.broadcast %1 : vector<4x1xf32> to vector<4x256xf32>
    %263 = arith.addf %261, %262 : vector<4x256xf32>
    %c0_8 = arith.constant 0 : index
    %c0_9 = arith.constant 0 : index
    %c0_10 = arith.constant 0 : index
    %264 = vector.load %arg5[%c0_8, %c0_9, %c0_10] : memref<1x4x256xf32, #tpu.memory_space<vmem>>, vector<1x4x256xf32>
    %265 = vector.shape_cast %264 : vector<1x4x256xf32> to vector<4x256xf32>
    %266 = vector.shape_cast %263 : vector<4x256xf32> to vector<1x4x256xf32>
    tpu.vector_store %arg5[%c0_8, %c0_9, %c0_10], %266 {strides = array<i32>} : memref<1x4x256xf32, #tpu.memory_space<vmem>>, vector<1x4x256xf32>,
    return
  }
  func.func @transform_0(%arg0: i32) -> (i32, i32, i32) {
    %c0_i32 = arith.constant 0 : i32
    %c0_i32_0 = arith.constant 0 : i32
    %c0_i32_1 = arith.constant 0 : i32
    return %arg0, %c0_i32, %c0_i32_0 : i32, i32, i32
  }
  func.func @transform_1(%arg0: i32) -> (i32, i32) {
    %c0_i32 = arith.constant 0 : i32
    %c0_i32_0 = arith.constant 0 : i32
    %c0_i32_1 = arith.constant 0 : i32
    return %c0_i32, %c0_i32_0 : i32, i32
  }
  func.func @transform_2(%arg0: i32) -> (i32, i32) {
    %c0_i32 = arith.constant 0 : i32
    %c0_i32_0 = arith.constant 0 : i32
    %c0_i32_1 = arith.constant 0 : i32
    return %c0_i32, %c0_i32_0 : i32, i32
  }
  func.func @transform_3(%arg0: i32) -> (i32, i32) {
    %c0_i32 = arith.constant 0 : i32
    %c0_i32_0 = arith.constant 0 : i32
    %c0_i32_1 = arith.constant 0 : i32
    return %c0_i32, %c0_i32_0 : i32, i32
  }
  func.func @transform_4(%arg0: i32) -> (i32, i32, i32) {
    %c0_i32 = arith.constant 0 : i32
    %c0_i32_0 = arith.constant 0 : i32
    %c0_i32_1 = arith.constant 0 : i32
    return %arg0, %c0_i32, %c0_i32_0 : i32, i32, i32
  }
}

</mosaic_0001>

<bundles_post_ra>
// kernel: tpu_custom_call.1
= control target key start
LH: loop header
LB: loop body
LE: loop exit
PB: predicated region body
PF: predicated region fallthrough
CT: control target
= control target key end

     0   :  { %9 = vsyncpa [#allocation3], 0  ;;  %s1639_s0 = inlined_call_operand.hbm [shape: f32[2,4,256], index: 0, kind: input, shape index: {}]   ;;  %s1640_s1 = inlined_call_operand.vmem [shape: f32[4,36], index: 1, kind: input, shape index: {}]   ;;  %s1641_s2 = inlined_call_operand.vmem [shape: f32[4,1], index: 2, kind: input, shape index: {}]   ;;  %s1642_s3 = inlined_call_operand.hbm [shape: s32[1,256], index: 3, kind: input, shape index: {}]   ;;  %s1643_s4 = inlined_call_operand.hbm [shape: f32[2,4,256], index: 4, kind: output, shape index: {}]  }
   0x1   :  { %11 = vsyncpa [#allocation3 + $0x1], 0 }
   0x2   :  { %12 = vsyncpa [#allocation6], 0 }
   0x3   :  { %13 = vsyncpa [#allocation4], 0 }
   0x4   :  { %15 = vsyncpa [#allocation4 + $0x1], 0  ;;  %s1236_s15 = smov 0   ;;  %s1238_s16 = smov 0  }
   0x5   :  { %s1240_s17 = smov 0   ;;  %s1242_s18 = smov 0  }
   0x6 LB: > { %s1257_s19 = sadd.s32 4294967295, %s1166_s18   ;;  %s882_s20 = sadd.s32 4294967294, %s1166_s18   ;;  %s1166_s18 = sphi %s1242_s18, %s1653_s18   ;;  %s1162_s17 = sphi %s1240_s17, %s1652_s17   ;;  %s1158_s16 = sphi %s1238_s16, %s1651_s16   ;;  %s1154_s15 = sphi %s1236_s15, %s1650_s15  }
   0x7   : > { %p41_p0 = scmp.ne.s32.totalorder %s1158_s16, %s1154_s15  ;;  %p42_p1 = scmp.eq.s32.totalorder %s1257_s19, 0 }
   0x8   : > { %p128_p2 = scmp.eq.s32.totalorder %s1257_s19, 1  ;;  %p134_p3 = scmp.eq.s32.totalorder %s882_s20, 1 }
   0x9   : > { %p1266_p4 = por %p42_p1, %p41_p0  ;;  %p883_p5 = scmp.ge.s32.totalorder %s1166_s18, 1 }
   0xa   : > { %p1271_p6 = por %p134_p3, %p41_p0  ;;  %p141_p7 = scmp.lt.s32.totalorder %s1166_s18, 3 }
   0xb   : > { %s159_s25 = sshll.u32 %s1642_s3, 4  ;;  %s1168_s27 = smov [#allocation5]   ;;  %s160_s25 = int_to_ptr.hbm [resolvable:$true] %s159_s25 }
   0xc   : > { %p1279_p8 = pnand %p883_p5, %p141_p7  ;;  %s161_s28 = sshll.u32 %s1168_s27, 4  ;;  %s162_s28 = int_to_ptr.vmem [resolvable:$true] %s161_s28 }
   0xd   : > { %s1289_s29 = sadd.s32 1, %s1166_s18   ;;  %s28_s30 = sadd.s32 1, %s1162_s17 }
   0xe   : > { %p908_p10 = pneg %p1279_p8  ;;  %s25_s5 = ssub.s32 %s1166_s18, %s1289_s29 }
   0xf   : > { %p26_p12 = scmp.eq.s32.totalorder %s25_s5, 0  ;;  %p35_p13 = scmp.ne.s32.totalorder %s1162_s17, %s1158_s16 }
  0x10   : > { %p909_p11 = pnand %p908_p10, %p42_p1  ;;  %p36_p0 = scmp.eq.s32.totalorder %s1166_s18, 0 }
  0x11   : > { %s1298_s6 = scalar_select %p26_p12, %s1162_s17, %s28_s30  }
  0x12   : > { %911 = dma.hbm_to_vmem [thread:$0]  (!%p909_p11), %s160_s25, 32, %s162_s28, [#allocation6]  }
  0x13   : > { %p1302_p3 = por %p128_p2, %p35_p13  ;;  %p921_p5 = scmp.lt.s32.totalorder %s1166_s18, 2 }
  0x14   : > { %s172_s8 = sand.u32 1, %s1162_s17   ;;  %s898_s9 = sshll.u32 %s1166_s18, 3 }
  0x15   : > { %p37_p7 = por %p36_p0, %p35_p13  ;;  %s886_s10 = sshll.u32 %s172_s8, 3 }
  0x16   : > { %s181_s13 = scalar_lea.hbm %s1639_s0, %s898_s9  ;;  %s176_s20 = scalar_lea.vmem [#allocation2], %s886_s10 }
  0x17   : > { %s183_s14 = sshll.u32 %s181_s13, 4  ;;  %s185_s23 = sshll.u32 %s176_s20, 4  ;;  %s184_s14 = int_to_ptr.hbm [resolvable:$true] %s183_s14  ;;  %s186_s23 = int_to_ptr.vmem [resolvable:$true] %s185_s23 }
  0x18   : > { %p1312_p10 = pnand %p921_p5, %p37_p7  ;;  %s173_s25 = scalar_lea.sflag [#allocation3], %s172_s8 }
  0x19   : > { %s1066_s27 = sshra.s32 %s184_s14, 4  ;;  %s1073_s9 = scalar_lea.hbm %s1639_s0, 16  ;;  %s1067_s27 = int_to_ptr.hbm [resolvable:$true] %s1066_s27 }
  0x1a   : > { %s1068_s28 = scalar_lea.hbm %s1067_s27, 8  ;;  %p1070_p11 = pneg %p1312_p10 }
  0x1b   : > { %p1069_p2 = scmp.ne.s32.totalorder %s1067_s27, %s1068_s28  ;;  %p1074_p0 = scmp.lt.s32.totalorder %s1067_s27, %s1639_s0 }
  0x1c   : > { %p1075_p5 = scmp.lt.s32.totalorder %s1073_s9, %s1068_s28 }
  0x1d   : > { %p1071_p12 = pnand %p1070_p11, %p1069_p2 }
  0x1e   : > { %p1076_p7 = por %p1075_p5, %p1074_p0 }
  0x1f   : > { %p1072_p13 = pneg %p1071_p12 }
  0x21   : > { %p1077_p9 = pnand %p1076_p7, %p1072_p13 }
  0x23   : > { %1080 = shalt.err (!%p1077_p9)
}
  0x24   : > { %915 = dma.hbm_to_vmem [thread:$0]  (!%p1312_p10), %s184_s14, 128, %s186_s23, %s173_s25  }
  0x25   : > { %194 = sbr.rel (%p1279_p8) target bundleno = 414 (0x19e), region = 36  ;;  %s1329_s8 = sand.u32 (!%p1279_p8), 1, %s1158_s16  }
  0x26   : > { %s890_s12 = sshll.u32 (!%p1279_p8), %s1329_s8, 3  ;;  %s197_s13 = scalar_lea.sflag (!%p1279_p8), [#allocation3], %s1329_s8 }
  0x27   : > { %s200_s20 = scalar_lea.vmem (!%p1279_p8), [#allocation2], %s890_s12 }
  0x2a   : > { %1141 = dma.done.wait (%p1266_p4), %s197_s13, 128  }
  0x2b   : > { %1143 = vsyncadd (%p1266_p4), %s197_s13, 4294967168 }
  0x2c   : > { %1145 = dma.done.wait (%p42_p1), [#allocation6], 32  }
  0x2d   : > { %1147 = vsyncadd (%p42_p1), [#allocation6], 4294967264  ;;  %v1169_v0 = vmov 2   ;;  %v1170_v1 = vmov 0   ;;  %v1171_v2 = vmov 1   ;;  %v1349_v4 = vld [vmem:[%s200_s20] sm:$0xff] }
  0x2e   : > { %1001 = vset.pattern.permute.xlu1 %v1169_v0  ;;  %999 = vset.pattern.permute.xlu2 %v1170_v1  ;;  %v1347_v3 = vld [vmem:[%s1640_s1] sm:$0xf]  ;;  %236 = vst [vmem:[#allocation1] ss:$2 sm:$0xff] %v1349_v4  ;;  %v1172_v6 = vmov 4   ;;  %v1173_v7 = vmov 3  }
  0x2f   : > { %1000 = vset.pattern.permute.xlu0 %v1171_v2  ;;  %416 = vperm.xlu1 %1001, %v1347_v3   ;;  %s1174_s21 = smov 1   ;;  %v1175_v8 = vmov 6   ;;  %v1176_v11 = vmov 7   ;;  %v1177_v12 = vmov 5   ;;  %v1178_v15 = vmov 8   ;;  %s1180_s23 = smov 113  }
  0x30   : > { %396 = vperm.xlu2 %999, %v1347_v3   ;;  %406 = vperm.xlu0 %1000, %v1347_v3   ;;  %v1179_v16 = vmov 9   ;;  %v1181_v18 = vmov 10   ;;  %v1182_v19 = vmov 11   ;;  %s1183_s24 = smov 15   ;;  %v1184_v23 = vmov 12   ;;  %s1185_s25 = smov 127  }
  0x31   : > { %v1186_v26 = vmov 13   ;;  %v1187_v28 = vmov 14   ;;  %v1188_v30 = vmov 15   ;;  %s1189_s27 = smov 16   ;;  %s1190_s28 = smov 112   ;;  %v1191_v49 = vmov 17  }
  0x32   : > { %v231_v44 = vld [vmem:[#allocation5] sm:$0x3]  ;;  %vm260_vm1 = vcmask 924672   ;;  %vm248_vm2 = vcmask 7168   ;;  %v1192_v57 = vmov 16   ;;  %vm290_vm6 = vcmask 121856  }
  0x33   : > { %vm270_vm0 = vcmp.ge.s32.totalorder %v231_v44, 1  ;;  %vm312_vm5 = vcmp.ge.s32.totalorder %v231_v44, 15  ;;  %vm302_vm7 = vcmask 1039360   ;;  %vm363_vm10 = vcmask 916480   ;;  %s899_s9 = sshll.u32 %s1257_s19, 3  ;;  %s230_s20 = scalar_lea.vmem [#allocation7], %s890_s12 }
  0x34   : > { %v271_v46 = vsel %vm270_vm0, 1, %v1170_v1  ;;  %vm327_vm11 = vcmask 130048   ;;  %s797_s13 = scalar_lea.hbm %s1643_s4, %s899_s9  ;;  %s799_s26 = sshll.u32 %s230_s20, 4  ;;  %vm781_vm12 = vcmask 1043456   ;;  %s800_s26 = int_to_ptr.vmem [resolvable:$true] %s799_s26 }
  0x35   : > { %v237_v5 = vld.sshfl [vmem:[#allocation1 + $0x8] sm:$0xff pattern:$0x75316420]  ;;  %v273_v50 = vperm.slane %v271_v46, 1  ;;  %v272_v58 = vperm.slane %v271_v46, 0  ;;  %v1198_v46 = vmov 20  }
  0x36   : > { %241 = vst [vmem:[#allocation1] ss:$2 sm:$0xff] %v1349_v4  ;;  %s801_s14 = sshll.u32 %s797_s13, 4  ;;  %s786_s19 = scalar_lea.sflag [#allocation4], %s1329_s8  ;;  %s802_s14 = int_to_ptr.hbm [resolvable:$true] %s801_s14 }
  0x37   : > { %1003 = vset.pattern.permute.xlu1 %v1172_v6  ;;  %vm275_vm3 = vcmp.eq.s32.totalorder %v273_v50, 1  ;;  %vm274_vm4 = vcmp.eq.s32.totalorder %v272_v58, 1  ;;  %v1200_v50 = vmov 26   ;;  %v1204_v58 = vmov 25   ;;  %s1116_s12 = scalar_lea.hbm %s1643_s4, 16 }
  0x38   : > { %1002 = vset.pattern.permute.xlu2 %v1173_v7  ;;  %436 = vperm.xlu1 %1003, %v1347_v3  }
  0x39   : > { %426 = vperm.xlu2 %1002, %v1347_v3   ;;  %238 = vrot.lane.b32.xlu0 %v237_v5, %s1174_s21 }
  0x3a   : > { %1005 = vset.pattern.permute.xlu0 %v1175_v8 }
  0x3d   : > { %v243_v9 = vld.sshfl [vmem:[#allocation1 + $0x8] sm:$0xff pattern:$0x75316420]  ;;  %v242_v10 = vld.sshfl [vmem:[#allocation1] sm:$0xff pattern:$0x75316420] }
  0x3e   : > { %253 = vst [vmem:[#allocation1] ss:$2 sm:$0xff] %v1349_v4 }
  0x40   : > { %1006 = vset.pattern.permute.xlu1 %v1176_v11 }
  0x41   : > { %1004 = vset.pattern.permute.xlu2 %v1177_v12  ;;  %466 = vperm.xlu1 %1006, %v1347_v3   ;;  %v1194_v12 = vmov 21  }
  0x42   : > { %446 = vperm.xlu2 %1004, %v1347_v3   ;;  %244 = vrot.lane.b32.xlu0 %v242_v10, %s1174_s21 }
  0x45   : > { %v254_v13 = vld.sshfl [vmem:[#allocation1] sm:$0xff pattern:$0x75316420]  ;;  %v255_v14 = vld.sshfl [vmem:[#allocation1 + $0x8] sm:$0xff pattern:$0x75316420] }
  0x46   : > { %264 = vst [vmem:[#allocation1] ss:$2 sm:$0xff] %v1349_v4 }
  0x49   : > { %246 = vrot.lane.b32.xlu1 %v243_v9, %s1174_s21  ;;  %v1193_v9 = vmov 18   ;;  %s1110_s21 = sshra.s32 %s802_s14, 4  ;;  %s1111_s21 = int_to_ptr.hbm [resolvable:$true] %s1110_s21 }
  0x4a   : > { %1007 = vset.pattern.permute.xlu2 %v1178_v15  ;;  %1008 = vset.pattern.permute.xlu1 %v1179_v16  ;;  %v313_v15 = vsel %vm312_vm5, 1, %v1170_v1  ;;  %p1117_p9 = scmp.lt.s32.totalorder %s1111_s21, %s1643_s4 }
  0x4b   : > { %476 = vperm.xlu2 %1007, %v1347_v3   ;;  %456 = vperm.xlu0 %1005, %v1347_v3  }
  0x4d   : > { %v265_v17 = vld.sshfl [vmem:[#allocation1] sm:$0xff pattern:$0x75316420] }
  0x4e   : > { %278 = vst [vmem:[#allocation1] ss:$2 sm:$0xff] %v1349_v4 }
  0x51   : > { %256 = vrot.lane.b32.xlu1 %v254_v13, %s1180_s23 }
  0x53   : > { %258 = vrot.lane.b32.xlu2 %v255_v14, %s1180_s23  ;;  %1010 = vset.pattern.permute.xlu0 %v1182_v19 }
  0x54   : > { %1009 = vset.pattern.permute.xlu2 %v1181_v18 }
  0x55   : > { %v279_v20 = vld.sshfl [vmem:[#allocation1 + $0x8] sm:$0xff pattern:$0x75316420] }
  0x56   : > { %283 = vst [vmem:[#allocation1] ss:$2 sm:$0xff] %v1349_v4  ;;  %280 = vrot.lane.b32.xlu0 %v279_v20, %s1183_s24  ;;  %v1195_v20 = vmov 19  }
  0x59   : > { %486 = vperm.xlu1 %1008, %v1347_v3  }
  0x5b   : > { %266 = vrot.lane.b32.xlu2 %v265_v17, %s1180_s23  ;;  %s1112_s23 = scalar_lea.hbm %s1111_s21, 8 }
  0x5c   : > { %p1113_p1 = scmp.ne.s32.totalorder %s1111_s21, %s1112_s23  ;;  %p1118_p10 = scmp.lt.s32.totalorder %s1116_s12, %s1112_s23 }
  0x5d   : > { %v284_v21 = vld.sshfl [vmem:[#allocation1] sm:$0xff pattern:$0x75316420]  ;;  %v285_v22 = vld.sshfl [vmem:[#allocation1 + $0x8] sm:$0xff pattern:$0x75316420] }
  0x5e   : > { %295 = vst [vmem:[#allocation1] ss:$2 sm:$0xff] %v1349_v4  ;;  %p1114_p4 = pnand %p1113_p1, %p1302_p3  ;;  %p1119_p2 = por %p1118_p10, %p1117_p9 }
  0x60   : > { %p1115_p8 = pneg %p1114_p4 }
  0x61   : > { %286 = vrot.lane.b32.xlu1 %v284_v21, %s1183_s24  ;;  %v314_v21 = vperm.slane %v313_v15, 0 }
  0x62   : > { %1011 = vset.pattern.permute.xlu1 %v1184_v23  ;;  %p1120_p11 = pnand %p1119_p2, %p1115_p8 }
  0x63   : > { %496 = vperm.xlu2 %1009, %v1347_v3   ;;  %vm316_vm8 = vcmp.eq.s32.totalorder %v314_v21, 1 }
  0x65   : > { %v296_v24 = vld.sshfl [vmem:[#allocation1] sm:$0xff pattern:$0x75316420]  ;;  %v297_v25 = vld.sshfl [vmem:[#allocation1 + $0x8] sm:$0xff pattern:$0x75316420] }
  0x66   : > { %298 = vrot.lane.b32.xlu0 %v296_v24, %s1185_s25  ;;  %306 = vst [vmem:[#allocation1] ss:$2 sm:$0xff] %v1349_v4 }
  0x69   : > { %516 = vperm.xlu1 %1011, %v1347_v3  }
  0x6b   : > { %288 = vrot.lane.b32.xlu2 %v285_v22, %s1183_s24  ;;  %v315_v22 = vperm.slane %v313_v15, 1 }
  0x6c   : > { %1012 = vset.pattern.permute.xlu2 %v1186_v26 }
  0x6d   : > { %v307_v27 = vld.sshfl [vmem:[#allocation1] sm:$0xff pattern:$0x75316420]  ;;  %vm317_vm9 = vcmp.eq.s32.totalorder %v315_v22, 1 }
  0x6e   : > { %506 = vperm.xlu0 %1010, %v1347_v3   ;;  %332 = vst [vmem:[#allocation1] ss:$2 sm:$0xff] %v1349_v4 }
  0x71   : > { %300 = vrot.lane.b32.xlu1 %v297_v25, %s1185_s25 }
  0x72   : > { %1013 = vset.pattern.permute.xlu1 %v1187_v28 }
  0x73   : > { %526 = vperm.xlu2 %1012, %v1347_v3  }
  0x75   : > { %v333_v29 = vld.sshfl [vmem:[#allocation1 + $0x8] sm:$0xff pattern:$0x75316420] }
  0x76   : > { %337 = vst [vmem:[#allocation1] ss:$2 sm:$0xff] %v1349_v4  ;;  %1015 = vset.pattern.permute.xlu0 %v1192_v57  ;;  %v1203_v57 = vmov 31  }
  0x79   : > { %536 = vperm.xlu1 %1013, %v1347_v3  }
  0x7b   : > { %308 = vrot.lane.b32.xlu2 %v307_v27, %s1185_s25 }
  0x7c   : > { %1014 = vset.pattern.permute.xlu2 %v1188_v30 }
  0x7d   : > { %v338_v31 = vld.sshfl [vmem:[#allocation1] sm:$0xff pattern:$0x75316420]  ;;  %v339_v32 = vld.sshfl [vmem:[#allocation1 + $0x8] sm:$0xff pattern:$0x75316420] }
  0x7e   : > { %340 = vrot.lane.b32.xlu0 %v338_v31, %s1189_s27  ;;  %369 = vst [vmem:[#allocation1] ss:$2 sm:$0xff] %v1349_v4 }
  0x81   : > { %342 = vrot.lane.b32.xlu1 %v339_v32, %s1189_s27  ;;  %v1196_v32 = vmov 22  }
  0x82   : > { %1016 = vset.pattern.permute.xlu1 %v1191_v49 }
  0x83   : > { %334 = vrot.lane.b32.xlu2 %v333_v29, %s1189_s27 }
  0x85   : > { %v371_v33 = vld.sshfl [vmem:[#allocation1 + $0x8] sm:$0xff pattern:$0x75316420]  ;;  %v370_v35 = vld.sshfl [vmem:[#allocation1] sm:$0xff pattern:$0x75316420] }
  0x86   : > { %372 = vrot.lane.b32.xlu0 %v370_v35, %s1190_s28  ;;  %379 = vst [vmem:[#allocation1] ss:$2 sm:$0xff] %v1349_v4 }
  0x89   : > { %374 = vrot.lane.b32.xlu1 %v371_v33, %s1190_s28 }
  0x8a   : > { %v1380_v34 = vpop.permute.xlu2 %396 }
  0x8b   : > { %546 = vperm.xlu2 %1014, %v1347_v3  }
  0x8d   : > { %v380_v37 = vld.sshfl [vmem:[#allocation1] sm:$0xff pattern:$0x75316420] }
  0x93   : > { %v1386_v36 = vpop.permute.xlu2 %426  ;;  %381 = vrot.lane.b32.xlu2 %v380_v37, %s1190_s28 }
  0x94   : > { %1017 = vset.pattern.permute.xlu2 %v1193_v9  ;;  %v1208_v9 = vmov 30  }
  0x9c   : > { %v1389_v38 = vpop.permute.xlu2 %446 }
  0xa1   : > { %v1391_v39 = vpop.permute.xlu1 %416 }
  0xa2   : > { %v1395_v41 = vpop.permute.xlu0 %406 }
  0xa5   : > { %v1393_v40 = vpop.permute.xlu2 %476 }
  0xaa   : > { %v1397_v42 = vpop.permute.xlu1 %436 }
  0xab   : > { %v239_v45 = vpop.permute.xlu0 %238 }
  0xad   : > { %v259_v43 = vpop.permute.xlu2 %258 }
  0xb3   : > { %v1400_v47 = vpop.permute.xlu1 %466 }
  0xb4   : > { %v245_v51 = vpop.permute.xlu0 %244 }
  0xb5   : > { %v267_v48 = vpop.permute.xlu2 %266  ;;  %v252_v60 = vsel %vm248_vm2, %v239_v45, %v245_v51  ;;  %v1197_v45 = vmov 24  }
  0xb6   : > { %v269_v52 = vsel %vm260_vm1, %v259_v43, %v267_v48  ;;  %v1199_v48 = vmov 27  }
  0xbb   : > { %v247_v53 = vpop.permute.xlu1 %246 }
  0xbc   : > { %v249_v54 = vsel %vm248_vm2, %v245_v51, %v247_v53  ;;  %v1201_v51 = vmov 23  }
  0xbd   : > { %v1403_v55 = vpop.permute.xlu2 %496  ;;  %v1405_v56 = vsel %vm275_vm3, %v249_v54, %v269_v52  ;;  %v1427_v10 = vpop.permute.xlu0 %456  ;;  %v1202_v52 = vmov 29  }
  0xbe   : > { %361 = vrot.lane.b32.xlu2 %v1405_v56, %s1190_s28  ;;  %321 = vrot.lane.b32.xlu0 %v1405_v56, %s1189_s27  ;;  %v530_v5 = vperm.slane %v1405_v56, 1  ;;  %v520_v14 = vperm.slane %v1405_v56, 0  ;;  %v540_v35 = vperm.slane %v1405_v56, 2 }
  0xc3   : > { %v257_v59 = vpop.permute.xlu1 %256 }
  0xc4   : > { %v261_v61 = vsel %vm260_vm1, %v257_v59, %v259_v43  ;;  %v1205_v59 = vmov 32  }
  0xc5   : > { %v289_v62 = vpop.permute.xlu2 %288  ;;  %v1412_v63 = vsel %vm274_vm4, %v252_v60, %v261_v61 }
  0xc6   : > { %325 = vrot.lane.b32.xlu1 %v1412_v63, %s1189_s27  ;;  %556 = vperm.xlu0 %1015, %v1347_v3   ;;  %v529_v2 = vperm.slane %v1412_v63, 1  ;;  %v519_v13 = vperm.slane %v1412_v63, 0  ;;  %v539_v33 = vperm.slane %v1412_v63, 2 }
  0xc8   : > { %v281_v16 = vpop.permute.xlu0 %280 }
  0xcb   : > { %v1417_v0 = vpop.permute.xlu1 %486 }
  0xcd   : > { %v527_v6 = vpop.permute.xlu2 %526 }
  0xce   : > { %v1421_v7 = vmul.f32 %v529_v2, %v527_v6  ;;  %v1423_v8 = vmul.f32 %v530_v5, %v527_v6  ;;  %359 = vrot.lane.b32.xlu1 %v1412_v63, %s1190_s28  ;;  %1020 = vset.pattern.permute.xlu0 %v1194_v12  ;;  %v1206_v5 = vmov 28   ;;  %v1207_v6 = vmov 34  }
  0xcf   : > { %v1209_v12 = vmov 33  }
  0xd3   : > { %v287_v11 = vpop.permute.xlu1 %286 }
  0xd4   : > { %v291_v26 = vsel %vm290_vm6, %v287_v11, %v289_v62  ;;  %v294_v27 = vsel %vm290_vm6, %v281_v16, %v287_v11  ;;  %v232_v62 = vld [vmem:[%s1641_s2] sm:$0xf] }
  0xd5   : > { %v309_v23 = vpop.permute.xlu2 %308 }
  0xd6   : > { %570 = vperm.xlu1 %1016, %v1347_v3  }
  0xd8   : > { %v299_v24 = vpop.permute.xlu0 %298 }
  0xdb   : > { %v517_v17 = vpop.permute.xlu1 %516 }
  0xdc   : > { %v1433_v18 = vmul.f32 %v519_v13, %v517_v17  ;;  %v1435_v19 = vmul.f32 %v520_v14, %v517_v17  ;;  %v1210_v13 = vmov 35  }
  0xdd   : > { %v335_v11 = vpop.permute.xlu2 %334 }
  0xde   : > { %1018 = vset.pattern.permute.xlu1 %v1195_v20 }
  0xdf   : > { %598 = vperm.xlu1 %1018, %v1347_v3  }
  0xe0   : > { %v1460_v49 = vpop.permute.xlu0 %506 }
  0xe3   : > { %v301_v25 = vpop.permute.xlu1 %300 }
  0xe4   : > { %v303_v28 = vsel %vm302_vm7, %v299_v24, %v301_v25  ;;  %v311_v29 = vsel %vm302_vm7, %v301_v25, %v309_v23 }
  0xe5   : > { %v1438_v30 = vsel %vm316_vm8, %v294_v27, %v303_v28  ;;  %v1440_v31 = vsel %vm317_vm9, %v291_v26, %v311_v29 }
  0xe6   : > { %349 = vrot.lane.b32.xlu2 %v1440_v31, %s1189_s27  ;;  %353 = vrot.lane.b32.xlu0 %v1438_v30, %s1189_s27 }
  0xe7   : > { %1021 = vset.pattern.permute.xlu1 %v1196_v32 }
  0xe8   : > { %632 = vperm.xlu1 %1021, %v1347_v3  }
  0xeb   : > { %v537_v37 = vpop.permute.xlu1 %536 }
  0xec   : > { %v1449_v43 = vmul.f32 %v539_v33, %v537_v37  ;;  %v1451_v44 = vmul.f32 %v540_v35, %v537_v37 }
  0xee   : > { %584 = vperm.xlu2 %1017, %v1347_v3   ;;  %385 = vrot.lane.b32.xlu0 %v1438_v30, %s1190_s28 }
  0xf0   : > { %1023 = vset.pattern.permute.xlu1 %v1197_v45  ;;  %v341_v53 = vpop.permute.xlu0 %340 }
  0xf1   : > { %652 = vperm.xlu1 %1023, %v1347_v3   ;;  %v347_v17 = vsel %vm327_vm11, %v335_v11, %v341_v53 }
  0xf3   : > { %v343_v54 = vpop.permute.xlu1 %342 }
  0xf4   : > { %v344_v20 = vsel %vm327_vm11, %v341_v53, %v343_v54  ;;  %v449_v54 = vperm.slane %v347_v17, 1 }
  0xf5   : > { %v460_v11 = vperm.slane %v344_v20, 2 }
  0xf6   : > { %1019 = vset.pattern.permute.xlu2 %v1198_v46  ;;  %622 = vperm.xlu0 %1020, %v1347_v3   ;;  %v439_v46 = vperm.slane %v347_v17, 0 }
  0xf7   : > { %612 = vperm.xlu2 %1019, %v1347_v3  }
  0xf8   : > { %v373_v60 = vpop.permute.xlu0 %372 }
  0xf9   : > { %1026 = vset.pattern.permute.xlu1 %v1199_v48  ;;  %v440_v48 = vperm.slane %v344_v20, 0 }
  0xfa   : > { %682 = vperm.xlu1 %1026, %v1347_v3  }
  0xfb   : > { %v1468_v61 = vpop.permute.xlu1 %374 }
  0xfc   : > { %v1475_v2 = vsel %vm363_vm10, %v373_v60, %v1468_v61 }
  0xfe   : > { %1025 = vset.pattern.permute.xlu0 %v1200_v50 }
  0xff   : > { %1022 = vset.pattern.permute.xlu2 %v1201_v51  ;;  %672 = vperm.xlu0 %1025, %v1347_v3  }
 0x100   : > { %642 = vperm.xlu2 %1022, %v1347_v3  }
 0x102   : > { %1028 = vset.pattern.permute.xlu1 %v1202_v52 }
 0x103   : > { %702 = vperm.xlu1 %1028, %v1347_v3  }
 0x107   : > { %1030 = vset.pattern.permute.xlu0 %v1203_v57  ;;  %v450_v57 = vperm.slane %v344_v20, 1 }
 0x108   : > { %1024 = vset.pattern.permute.xlu2 %v1204_v58  ;;  %722 = vperm.xlu0 %1030, %v1347_v3  }
 0x109   : > { %662 = vperm.xlu2 %1024, %v1347_v3  }
 0x10b   : > { %1031 = vset.pattern.permute.xlu1 %v1205_v59 }
 0x10c   : > { %732 = vperm.xlu1 %1031, %v1347_v3  }
 0x110   : > { %1035 = vset.pattern.permute.xlu0 %v1170_v1  ;;  %v1484_v1 = vpop.permute.xlu2 %546 }
 0x111   : > { %1027 = vset.pattern.permute.xlu2 %v1206_v5  ;;  %773 = vperm.xlu0 %1035, %v232_v62   ;;  %v459_v5 = vperm.slane %v347_v17, 2 }
 0x112   : > { %692 = vperm.xlu2 %1027, %v1347_v3  }
 0x114   : > { %387 = vrot.lane.b32.xlu1 %v1440_v31, %s1190_s28 }
 0x115   : > { %1033 = vset.pattern.permute.xlu1 %v1207_v6 }
 0x118   : > { %v1487_v14 = vpop.permute.xlu2 %381 }
 0x11a   : > { %1029 = vset.pattern.permute.xlu2 %v1208_v9  ;;  %v442_v9 = vmul.f32 %v440_v48, %v1397_v42 }
 0x11b   : > { %712 = vperm.xlu2 %1029, %v1347_v3  }
 0x11c   : > { %752 = vperm.xlu1 %1033, %v1347_v3  }
 0x120   : > { %v1491_v21 = vpop.permute.xlu2 %361 }
 0x123   : > { %1032 = vset.pattern.permute.xlu2 %v1209_v12 }
 0x124   : > { %742 = vperm.xlu2 %1032, %v1347_v3  }
 0x12c   : > { %1034 = vset.pattern.permute.xlu2 %v1210_v13 }
 0x12d   : > { %762 = vperm.xlu2 %1034, %v1347_v3  }
 0x130   : > { %v322_v15 = vpop.permute.xlu0 %321 }
 0x138   : > { %v326_v16 = vpop.permute.xlu1 %325 }
 0x139   : > { %v328_v22 = vsel %vm327_vm11, %v326_v16, %v322_v15  ;;  %v331_v23 = vsel %vm327_vm11, %v322_v15, %v326_v16  ;;  %v469_v15 = vperm.slane %v347_v17, 3  ;;  %v452_v16 = vmul.f32 %v450_v57, %v1389_v38 }
 0x13a   : > { %v399_v24 = vperm.slane %v331_v23, 0  ;;  %v400_v25 = vperm.slane %v328_v22, 0  ;;  %v409_v26 = vperm.slane %v331_v23, 1  ;;  %v410_v27 = vperm.slane %v328_v22, 1 }
 0x13b   : > { %v419_v3 = vperm.slane %v331_v23, 2  ;;  %v420_v28 = vperm.slane %v328_v22, 2  ;;  %v429_v29 = vperm.slane %v331_v23, 3  ;;  %v430_v32 = vperm.slane %v328_v22, 3 }
 0x13c   : > { %v401_v33 = vmul.f32 %v399_v24, %v1380_v34  ;;  %v402_v35 = vmul.f32 %v400_v25, %v1380_v34  ;;  %v411_v37 = vmul.f32 %v409_v26, %v1395_v41  ;;  %v412_v45 = vmul.f32 %v410_v27, %v1395_v41 }
 0x13d   : > { %v421_v52 = vmul.f32 %v419_v3, %v1391_v39  ;;  %v422_v53 = vmul.f32 %v420_v28, %v1391_v39  ;;  %v431_v60 = vmul.f32 %v429_v29, %v1386_v36  ;;  %v432_v34 = vmul.f32 %v430_v32, %v1386_v36 }
 0x13e   : > { %v413_v50 = vadd.f32 %v411_v37, %v401_v33  ;;  %v414_v51 = vadd.f32 %v412_v45, %v402_v35  ;;  %v441_v41 = vmul.f32 %v439_v46, %v1397_v42  ;;  %v451_v39 = vmul.f32 %v449_v54, %v1389_v38 }
 0x13f   : > { %v470_v22 = vperm.slane %v344_v20, 3  ;;  %v461_v36 = vmul.f32 %v459_v5, %v1427_v10  ;;  %v462_v25 = vmul.f32 %v460_v11, %v1427_v10  ;;  %v471_v3 = vmul.f32 %v469_v15, %v1400_v47  ;;  %v557_v20 = vpop.permute.xlu0 %556 }
 0x140   : > { %v423_v58 = vadd.f32 %v421_v52, %v413_v50  ;;  %v424_v59 = vadd.f32 %v422_v53, %v414_v51  ;;  %v1503_v62 = vpop.permute.xlu1 %359  ;;  %v350_v6 = vpop.permute.xlu2 %349 }
 0x141   : > { %v472_v42 = vmul.f32 %v470_v22, %v1400_v47 }
 0x142   : > { %v433_v12 = vadd.f32 %v431_v60, %v423_v58  ;;  %v434_v13 = vadd.f32 %v432_v34, %v424_v59 }
 0x144   : > { %v443_v23 = vadd.f32 %v441_v41, %v433_v12  ;;  %v444_v24 = vadd.f32 %v442_v9, %v434_v13 }
 0x146   : > { %v453_v26 = vadd.f32 %v451_v39, %v443_v23  ;;  %v454_v27 = vadd.f32 %v452_v16, %v444_v24  ;;  %v559_v24 = vperm.slane %v1349_v4, 0 }
 0x148   : > { %v1513_v28 = vpop.permute.xlu1 %570  ;;  %v463_v29 = vadd.f32 %v461_v36, %v453_v26  ;;  %v464_v32 = vadd.f32 %v462_v25, %v454_v27  ;;  %v1515_v38 = vpop.permute.xlu2 %584  ;;  %v573_v26 = vperm.slane %v1349_v4, 1  ;;  %v574_v27 = vperm.slane %v1349_v4, 5 }
 0x14a   : > { %v473_v17 = vadd.f32 %v471_v3, %v463_v29  ;;  %v474_v33 = vadd.f32 %v472_v42, %v464_v32  ;;  %v549_v42 = vperm.slane %v1412_v63, 3  ;;  %v587_v29 = vperm.slane %v1349_v4, 2 }
 0x14b   : > { %v588_v32 = vperm.slane %v1349_v4, 6  ;;  %v601_v63 = vperm.slane %v1349_v4, 3 }
 0x151   : > { %v1517_v35 = vpop.permute.xlu1 %598  ;;  %v1519_v37 = vpop.permute.xlu2 %612 }
 0x158   : > { %v354_v10 = vpop.permute.xlu0 %353 }
 0x159   : > { %v355_v45 = vsel %vm327_vm11, %v354_v10, %v350_v6  ;;  %v358_v46 = vsel %vm327_vm11, %v350_v6, %v354_v10 }
 0x15a   : > { %v479_v48 = vperm.slane %v358_v46, 0  ;;  %v480_v47 = vperm.slane %v355_v45, 0  ;;  %v489_v50 = vperm.slane %v358_v46, 1  ;;  %v490_v51 = vperm.slane %v355_v45, 1  ;;  %v1523_v52 = vpop.permute.xlu1 %632  ;;  %v1529_v9 = vpop.permute.xlu2 %642 }
 0x15b   : > { %v499_v57 = vperm.slane %v358_v46, 2  ;;  %v500_v58 = vperm.slane %v355_v45, 2  ;;  %v509_v59 = vperm.slane %v358_v46, 3  ;;  %v510_v60 = vperm.slane %v355_v45, 3 }
 0x15c   : > { %v481_v53 = vmul.f32 %v479_v48, %v1393_v40  ;;  %v482_v54 = vmul.f32 %v480_v47, %v1393_v40  ;;  %v491_v5 = vmul.f32 %v489_v50, %v1417_v0  ;;  %v492_v6 = vmul.f32 %v490_v51, %v1417_v0 }
 0x15d   : > { %v501_v13 = vmul.f32 %v499_v57, %v1403_v55  ;;  %v502_v39 = vmul.f32 %v500_v58, %v1403_v55  ;;  %v511_v16 = vmul.f32 %v509_v59, %v1460_v49  ;;  %v512_v22 = vmul.f32 %v510_v60, %v1460_v49 }
 0x15e   : > { %v483_v34 = vadd.f32 %v481_v53, %v473_v17  ;;  %v484_v41 = vadd.f32 %v482_v54, %v474_v33  ;;  %v560_v0 = vperm.slane %v1349_v4, 4  ;;  %v550_v49 = vperm.slane %v1405_v56, 3 }
 0x15f   : > { %v563_v17 = vperm.slane %v559_v24, 0  ;;  %v602_v56 = vperm.slane %v1349_v4, 7  ;;  %v577_v47 = vperm.slane %v573_v26, 1  ;;  %v578_v50 = vperm.slane %v574_v27, 1 }
 0x160   : > { %v493_v11 = vadd.f32 %v491_v5, %v483_v34  ;;  %v494_v12 = vadd.f32 %v492_v6, %v484_v41  ;;  %v564_v33 = vperm.slane %v560_v0, 0  ;;  %v1549_v46 = vpop.permute.xlu0 %385  ;;  %v591_v53 = vperm.slane %v587_v29, 2 }
 0x161   : > { %v565_v54 = vmul.f32 %v563_v17, %v557_v20  ;;  %v606_v34 = vperm.slane %v602_v56, 3  ;;  %v579_v4 = vmul.f32 %v577_v47, %v1513_v28  ;;  %v580_v41 = vmul.f32 %v578_v50, %v1513_v28 }
 0x162   : > { %v503_v15 = vadd.f32 %v501_v13, %v493_v11  ;;  %v504_v40 = vadd.f32 %v502_v39, %v494_v12  ;;  %v566_v57 = vmul.f32 %v564_v33, %v557_v20  ;;  %v615_v20 = vperm.slane %v1438_v30, 0 }
 0x163   : > { %v1535_v23 = vpop.permute.xlu1 %652  ;;  %v1555_v48 = vpop.permute.xlu2 %662  ;;  %v616_v13 = vperm.slane %v1440_v31, 0  ;;  %v625_v28 = vperm.slane %v1438_v30, 1  ;;  %v626_v24 = vperm.slane %v1440_v31, 1  ;;  %v364_v27 = vsel %vm363_vm10, %v1503_v62, %v1491_v21 }
 0x164   : > { %v513_v36 = vadd.f32 %v511_v16, %v503_v15  ;;  %v514_v25 = vadd.f32 %v512_v22, %v504_v40  ;;  %v608_v15 = vmul.f32 %v606_v34, %v1517_v35  ;;  %v646_v33 = vperm.slane %v1440_v31, 3 }
 0x166   : > { %v523_v55 = vadd.f32 %v1433_v18, %v513_v36  ;;  %v524_v3 = vadd.f32 %v1435_v19, %v514_v25  ;;  %v551_v18 = vmul.f32 %v549_v42, %v1484_v1  ;;  %v552_v19 = vmul.f32 %v550_v49, %v1484_v1 }
 0x167   : > { %v605_v1 = vperm.slane %v601_v63, 3  ;;  %v618_v36 = vmul.f32 %v616_v13, %v1519_v37  ;;  %v648_v56 = vmul.f32 %v646_v33, %v1529_v9 }
 0x168   : > { %v533_v10 = vadd.f32 %v1421_v7, %v523_v55  ;;  %v534_v45 = vadd.f32 %v1423_v8, %v524_v3  ;;  %v592_v8 = vperm.slane %v588_v32, 2  ;;  %v623_v40 = vpop.permute.xlu0 %622  ;;  %v635_v55 = vperm.slane %v1438_v30, 2 }
 0x169   : > { %v607_v39 = vmul.f32 %v605_v1, %v1517_v35  ;;  %v368_v35 = vsel %vm363_vm10, %v1491_v21, %v1503_v62  ;;  %v636_v3 = vperm.slane %v1440_v31, 2  ;;  %v627_v32 = vmul.f32 %v625_v28, %v623_v40 }
 0x16a   : > { %v543_v51 = vadd.f32 %v1449_v43, %v533_v10  ;;  %v544_v7 = vadd.f32 %v1451_v44, %v534_v45  ;;  %v593_v43 = vmul.f32 %v591_v53, %v1515_v38  ;;  %v594_v44 = vmul.f32 %v592_v8, %v1515_v38 }
 0x16b   : > { %v617_v38 = vmul.f32 %v615_v20, %v1519_v37  ;;  %v628_v17 = vmul.f32 %v626_v24, %v623_v40  ;;  %v645_v37 = vperm.slane %v1438_v30, 3  ;;  %v637_v10 = vmul.f32 %v635_v55, %v1523_v52 }
 0x16c   : > { %v553_v58 = vadd.f32 %v551_v18, %v543_v51  ;;  %v554_v59 = vadd.f32 %v552_v19, %v544_v7  ;;  %v1559_v60 = vpop.permute.xlu1 %682  ;;  %v693_v0 = vpop.permute.xlu2 %692  ;;  %v638_v45 = vmul.f32 %v636_v3, %v1523_v52  ;;  %v655_v21 = vperm.slane %v364_v27, 0 }
 0x16d   : > { %v656_v62 = vperm.slane %v368_v35, 0  ;;  %v647_v63 = vmul.f32 %v645_v37, %v1529_v9  ;;  %v665_v51 = vperm.slane %v364_v27, 1  ;;  %v666_v7 = vperm.slane %v368_v35, 1 }
 0x16e   : > { %v567_v5 = vadd.f32 %v565_v54, %v553_v58  ;;  %v568_v6 = vadd.f32 %v566_v57, %v554_v59  ;;  %v657_v30 = vmul.f32 %v655_v21, %v1535_v23  ;;  %v384_v52 = vsel %vm363_vm10, %v1468_v61, %v1487_v14 }
 0x16f   : > { %v658_v31 = vmul.f32 %v656_v62, %v1535_v23  ;;  %v675_v57 = vperm.slane %v364_v27, 2  ;;  %v676_v58 = vperm.slane %v368_v35, 2  ;;  %v667_v9 = vmul.f32 %v665_v51, %v1555_v48 }
 0x170   : > { %v581_v11 = vadd.f32 %v579_v4, %v567_v5  ;;  %v582_v12 = vadd.f32 %v580_v41, %v568_v6  ;;  %v668_v1 = vmul.f32 %v666_v7, %v1555_v48  ;;  %v685_v5 = vperm.slane %v364_v27, 3 }
 0x171   : > { %v673_v54 = vpop.permute.xlu0 %672  ;;  %v686_v6 = vperm.slane %v368_v35, 3  ;;  %v696_v20 = vperm.slane %v384_v52, 0  ;;  %v705_v48 = vperm.slane %v1475_v2, 1  ;;  %v715_v24 = vperm.slane %v1475_v2, 2 }
 0x172   : > { %v595_v16 = vadd.f32 %v593_v43, %v581_v11  ;;  %v596_v22 = vadd.f32 %v594_v44, %v582_v12  ;;  %v677_v44 = vmul.f32 %v675_v57, %v673_v54  ;;  %v678_v11 = vmul.f32 %v676_v58, %v673_v54 }
 0x173   : > { %v695_v12 = vperm.slane %v1475_v2, 0  ;;  %v687_v61 = vmul.f32 %v685_v5, %v1559_v60  ;;  %v688_v14 = vmul.f32 %v686_v6, %v1559_v60 }
 0x174   : > { %v609_v25 = vadd.f32 %v607_v39, %v595_v16  ;;  %v610_v26 = vadd.f32 %v608_v15, %v596_v22  ;;  %v706_v15 = vperm.slane %v384_v52, 1  ;;  %v698_v16 = vmul.f32 %v696_v20, %v693_v0 }
 0x175   : > { %v703_v42 = vpop.permute.xlu1 %702  ;;  %v713_v59 = vpop.permute.xlu2 %712  ;;  %v697_v40 = vmul.f32 %v695_v12, %v693_v0 }
 0x176   : > { %v619_v49 = vadd.f32 %v617_v38, %v609_v25  ;;  %v620_v29 = vadd.f32 %v618_v36, %v610_v26  ;;  %v716_v38 = vperm.slane %v384_v52, 2  ;;  %v725_v36 = vperm.slane %v1475_v2, 3 }
 0x177   : > { %v726_v25 = vperm.slane %v384_v52, 3  ;;  %v707_v55 = vmul.f32 %v705_v48, %v703_v42  ;;  %v708_v60 = vmul.f32 %v706_v15, %v703_v42 }
 0x178   : > { %v629_v18 = vadd.f32 %v627_v32, %v619_v49  ;;  %v630_v19 = vadd.f32 %v628_v17, %v620_v29  ;;  %v717_v29 = vmul.f32 %v715_v24, %v713_v59  ;;  %v718_v32 = vmul.f32 %v716_v38, %v713_v59 }
 0x17a   : > { %v639_v47 = vadd.f32 %v637_v10, %v629_v18  ;;  %v640_v50 = vadd.f32 %v638_v45, %v630_v19  ;;  %v723_v3 = vpop.permute.xlu0 %722 }
 0x17b   : > { %v727_v45 = vmul.f32 %v725_v36, %v723_v3  ;;  %v728_v18 = vmul.f32 %v726_v25, %v723_v3 }
 0x17c   : > { %v649_v53 = vadd.f32 %v647_v63, %v639_v47  ;;  %v650_v8 = vadd.f32 %v648_v56, %v640_v50 }
 0x17e   : > { %v659_v34 = vadd.f32 %v657_v30, %v649_v53  ;;  %v660_v4 = vadd.f32 %v658_v31, %v650_v8  ;;  %v733_v41 = vpop.permute.xlu1 %732  ;;  %v743_v26 = vpop.permute.xlu2 %742 }
 0x180   : > { %v669_v23 = vadd.f32 %v667_v9, %v659_v34  ;;  %v670_v43 = vadd.f32 %v668_v1, %v660_v4 }
 0x182   : > { %v679_v13 = vadd.f32 %v677_v44, %v669_v23  ;;  %v680_v39 = vadd.f32 %v678_v11, %v670_v43 }
 0x183   : > { %v774_v6 = vpop.permute.xlu0 %773 }
 0x184   : > { %v689_v22 = vadd.f32 %v687_v61, %v679_v13  ;;  %v690_v28 = vadd.f32 %v688_v14, %v680_v39 }
 0x186   : > { %v700_v27 = vadd.f32 %v698_v16, %v690_v28  ;;  %v699_v35 = vadd.f32 %v697_v40, %v689_v22  ;;  %v388_v49 = vpop.permute.xlu1 %387 }
 0x187   : > { %v389_v0 = vsel %vm363_vm10, %v1549_v46, %v388_v49  ;;  %v393_v17 = vsel %vm363_vm10, %v388_v49, %v1549_v46  ;;  %v763_v57 = vpop.permute.xlu2 %762 }
 0x188   : > { %v709_v37 = vadd.f32 %v707_v55, %v699_v35  ;;  %v710_v33 = vadd.f32 %v708_v60, %v700_v27  ;;  %v735_v10 = vperm.slane %v389_v0, 0  ;;  %v736_v2 = vperm.slane %v393_v17, 0 }
 0x189   : > { %v745_v62 = vperm.slane %v389_v0, 1  ;;  %v746_v42 = vperm.slane %v393_v17, 1  ;;  %v765_v51 = vperm.slane %v389_v0, 3  ;;  %v766_v7 = vperm.slane %v393_v17, 3 }
 0x18a   : > { %v719_v19 = vadd.f32 %v717_v29, %v709_v37  ;;  %v720_v21 = vadd.f32 %v718_v32, %v710_v33  ;;  %v737_v47 = vmul.f32 %v735_v10, %v733_v41  ;;  %v738_v50 = vmul.f32 %v736_v2, %v733_v41 }
 0x18b   : > { %v755_v30 = vperm.slane %v389_v0, 2  ;;  %v756_v31 = vperm.slane %v393_v17, 2  ;;  %v747_v53 = vmul.f32 %v745_v62, %v743_v26  ;;  %v748_v8 = vmul.f32 %v746_v42, %v743_v26 }
 0x18c   : > { %v729_v63 = vadd.f32 %v727_v45, %v719_v19  ;;  %v730_v56 = vadd.f32 %v728_v18, %v720_v21  ;;  %v767_v34 = vmul.f32 %v765_v51, %v763_v57  ;;  %v768_v4 = vmul.f32 %v766_v7, %v763_v57 }
 0x18e   : > { %v740_v46 = vadd.f32 %v738_v50, %v730_v56  ;;  %v753_v54 = vpop.permute.xlu1 %752  ;;  %v739_v52 = vadd.f32 %v737_v47, %v729_v63 }
 0x18f   : > { %v757_v58 = vmul.f32 %v755_v30, %v753_v54  ;;  %v758_v59 = vmul.f32 %v756_v31, %v753_v54 }
 0x190   : > { %v750_v9 = vadd.f32 %v748_v8, %v740_v46  ;;  %v749_v1 = vadd.f32 %v747_v53, %v739_v52 }
 0x192   : > { %v759_v5 = vadd.f32 %v757_v58, %v749_v1  ;;  %v760_v41 = vadd.f32 %v758_v59, %v750_v9 }
 0x194   : > { %v769_v23 = vadd.f32 %v767_v34, %v759_v5  ;;  %v770_v43 = vadd.f32 %v768_v4, %v760_v41 }
 0x196   : > { %v777_v44 = vadd.f32 %v774_v6, %v770_v43  ;;  %v776_v11 = vadd.f32 %v774_v6, %v769_v23 }
 0x198   : > { %v780_v12 = vrot.slane %v777_v44, 4 }
 0x19a   : > { %v782_v20 = vsel %vm781_vm12, %v776_v11, %v780_v12 }
 0x19b   : > { %784 = vst [vmem:[%s230_s20] sm:$0xff] %v782_v20 }
 0x19c   : > { %1123 = shalt.err (!%p1120_p11)
}
 0x19d   : > { %906 = dma.vmem_to_hbm [thread:$0]  (%p1302_p3), %s800_s26, 128, %s802_s14, %s786_s19  }
 0x19e PF: > { %s813_s8 = sand.u32 1, %s1154_s15   ;;  %p1649_p12 = scmp.ge.s32.totalorder %s1166_s18, 2 }
 0x19f   : > { %s814_s30 = scalar_lea.sflag [#allocation4], %s813_s8 }
 0x1a0   : > { %p917_p13 = pnand %p1649_p12, %p1271_p6 }
 0x1a2   : > { %p918_p0 = pneg %p917_p13 }
 0x1a4   : > { %1149 = dma.done.wait (%p918_p0), %s814_s30, 128  }
 0x1a5   : > { %1151 = vsyncadd (%p918_p0), %s814_s30, 4294967168  ;;  %p18_p5 = scmp.ge.s32.totalorder %s1289_s29, 4   ;;  %s1650_s15 = smov %s1158_s16 }
 0x1a6   : > { %s1651_s16 = smov %s1162_s17  ;;  %s1652_s17 = smov %s1298_s6 }
 0x1a7   : > { %s1653_s18 = smov %s1289_s29  ;;  %20 = sbr.rel (!%p18_p5) target bundleno = 6 (0x6), region = 85 }
 0x1ac   :  { %820 = vsyncpa [#allocation3], 1 }
 0x1ad   :  { %822 = vsyncpa [#allocation3 + $0x1], 1 }
 0x1ae   :  { %823 = vsyncpa [#allocation6], 1 }
 0x1af   :  { %824 = vsyncpa [#allocation4], 1 }
 0x1b0   :  { %826 = vsyncpa [#allocation4 + $0x1], 1 }

</bundles_post_ra>
